<compile_context>
chip_gen: v7x
topology: tpu7x:2x2x1
jax: 0.10.0
libtpu: 0.0.40
codegen_flags: <defaults>
</compile_context>

<pallas_src>
import functools

import jax
import jax.numpy as jnp
from jax import lax
from jax.experimental import pallas as pl
from jax.experimental.pallas import tpu as pltpu


def _round_up(x, m):
    return (x + m - 1) // m * m


def _cdiv(a, b):
    return (a + b - 1) // b


# --------------------------------------------------------------------------- #
# Tiling / VMEM budget selection
# --------------------------------------------------------------------------- #
def _vmem_cap_bytes():
    """Per-generation VMEM budget the kernel plans against."""
    try:
        kind = jax.devices()[0].device_kind.lower()
    except Exception:
        kind = ""
    if "v7" in kind or "7x" in kind:
        return 56 * 1024 * 1024        # v7x: 64 MiB physical per TensorCore
    return 100 * 1024 * 1024           # v5e / v6e: 128 MiB physical


def _vmem_estimate(tm, thp, cp, x_bytes, nh):
    """Rough per-step VMEM footprint in bytes for the chosen tiling."""
    wbuf = 1 if nh == 1 else 2                    # weight tiles resident when nh == 1
    w_kv = cp * 2 * thp * 2 * wbuf                # bf16 fused K|V tile
    b_kv = 2 * thp * 4 * wbuf
    w_out = thp * cp * 2 * wbuf
    w_r = cp * cp * 2                             # single-buffered (constant index)
    biases = 2 * cp * 4
    x_in = tm * cp * x_bytes * 2                  # double-buffered activations
    prev = cp * x_bytes * 2
    out = tm * cp * 4 * 2
    acc = tm * cp * 4
    tmp = tm * 2 * thp * 4 * 2 + tm * cp * 4 * 2  # f32 kv / mish / r temporaries
    return w_kv + b_kv + w_out + w_r + biases + x_in + prev + out + acc + tmp


def _select_block_hidden(cp, h_dim, cap_bytes, x_bytes=4):
    """Smallest number of hidden tiles (largest THp, multiple of 128) that fits."""
    h128 = _round_up(h_dim, 128)
    for nh in range(1, max(1, h128 // 128) + 1):
        thp = _round_up(_cdiv(h128, nh), 128)
        if _vmem_estimate(256, thp, cp, x_bytes, nh) <= 0.7 * cap_bytes:
            return thp
    return 128


def _select_block_rows(t, thp, cp, nh, cap_bytes, x_bytes):
    """Largest row tile (multiple of 8, <=512, <= padded T) fitting the budget."""
    t8 = _round_up(t, 8)
    candidates = sorted({512, 384, 256, 128, 64, 32, 16, 8, min(t8, 512)},
                        reverse=True)
    for tm in candidates:
        if tm > t8:
            continue
        if _vmem_estimate(tm, thp, cp, x_bytes, nh) <= 0.8 * cap_bytes:
            return tm
    return 8


# --------------------------------------------------------------------------- #
# Kernel
# --------------------------------------------------------------------------- #
def channel_mix_kernel(x_ref, prev_ref, w_kv_ref, b_kv_ref, w_out_ref,
                       w_r_ref, b_r_ref, b_out_ref, o_ref, acc_ref, *, ch):
    h = pl.program_id(1)
    nh = pl.num_programs(1)
    tm, cp = x_ref.shape
    thp = w_out_ref.shape[0]

    x = x_ref[...]                                            # (TM, Cp)

    # ---- time_shift on the first `ch` lanes, fused in-register --------------
    # shifted[t] = x[t-1]; row 0 takes the previous tile's last row (zero at
    # sequence starts).  pltpu.roll uses the XLU slot; no scratch round-trip.
    x_up = pltpu.roll(x, shift=1, axis=0)                     # x_up[t] = x[t-1]
    row = lax.broadcasted_iota(jnp.int32, (tm, cp), 0)
    lane = lax.broadcasted_iota(jnp.int32, (tm, cp), 1)
    prev = jnp.broadcast_to(prev_ref[0], (tm, cp))
    shifted = jnp.where(row == 0, prev, x_up)
    x_mix = jnp.where(lane < ch, shifted, x)
    xb = x_mix.astype(jnp.bfloat16)

    @pl.when(h == 0)
    def _():
        acc_ref[...] = jnp.zeros_like(acc_ref)

    # ---- fused K|V projection for this hidden tile (bf16 MXU, f32 accum) ----
    kv = jnp.dot(xb, w_kv_ref[...], preferred_element_type=jnp.float32)
    kv = kv + b_kv_ref[...]
    k = kv[:, :thp]                                           # 128-aligned slices
    v = kv[:, thp:]

    # mish(k) = k * tanh(softplus(k)) = k * ((1+e^k)^2 - 1) / ((1+e^k)^2 + 1)
    e = jnp.exp(jnp.minimum(k, 30.0))                         # clamp: no overflow
    p2 = (1.0 + e) * (1.0 + e)
    mish_k = k * (p2 - 1.0) / (p2 + 1.0)

    kvb = (mish_k * v).astype(jnp.bfloat16)
    acc_ref[...] += jnp.dot(kvb, w_out_ref[...], preferred_element_type=jnp.float32)

    # ---- receptance gate + output write on the last hidden step -------------
    @pl.when(h == nh - 1)
    def _():
        r = jnp.dot(xb, w_r_ref[...], preferred_element_type=jnp.float32)
        r = r + b_r_ref[...]
        wkv = acc_ref[...] + b_out_ref[...]
        o_ref[...] = (jax.nn.sigmoid(r) * wkv).astype(o_ref.dtype)


# --------------------------------------------------------------------------- #
# Parameter preparation (call once per layer, reuse across forward calls)
# --------------------------------------------------------------------------- #
def prepare_channel_mix_params(params, *, block_hidden=None, vmem_cap_bytes=None):
    """Pad to 128-multiples, interleave K|V per hidden tile, cast weights bf16."""
    C, H = params["wk"].shape
    Cp = _round_up(C, 128)
    cap = vmem_cap_bytes if vmem_cap_bytes is not None else _vmem_cap_bytes()
    THp = block_hidden if block_hidden is not None else _select_block_hidden(Cp, H, cap)
    assert THp % 128 == 0
    Hp = _round_up(H, THp)
    nh = Hp // THp

    def pad2(w, rows, cols):
        return jnp.pad(w, ((0, rows - w.shape[0]), (0, cols - w.shape[1])))

    wk = pad2(params["wk"], Cp, Hp).reshape(Cp, nh, THp)
    wv = pad2(params["wv"], Cp, Hp).reshape(Cp, nh, THp)
    w_kv = jnp.concatenate([wk, wv], axis=2).reshape(Cp, nh * 2 * THp)
    w_kv = w_kv.astype(jnp.bfloat16)

    bk = jnp.pad(params["bk"].reshape(-1), (0, Hp - H)).reshape(nh, THp)
    bv = jnp.pad(params["bv"].reshape(-1), (0, Hp - H)).reshape(nh, THp)
    b_kv = jnp.concatenate([bk, bv], axis=1).reshape(1, nh * 2 * THp)
    b_kv = b_kv.astype(jnp.float32)

    w_out = pad2(params["ww"], Hp, Cp).astype(jnp.bfloat16)
    b_out = jnp.pad(params["bw"].reshape(1, -1), ((0, 0), (0, Cp - C))).astype(jnp.float32)
    w_r = pad2(params["wr"], Cp, Cp).astype(jnp.bfloat16)
    b_r = jnp.pad(params["br"].reshape(1, -1), ((0, 0), (0, Cp - C))).astype(jnp.float32)

    return dict(w_kv=w_kv, b_kv=b_kv, w_out=w_out, b_out=b_out, w_r=w_r, b_r=b_r,
                C=C, H=H, Cp=Cp, Hp=Hp, THp=THp, nh=nh, vmem_cap=cap)


# --------------------------------------------------------------------------- #
# Wrapper
# --------------------------------------------------------------------------- #
def rwkv_channel_mix(x, prepared, *, block_rows=None):
    """x: (B, T, C) float32/bfloat16 -> (B, T, C) float32."""
    B, T, C = x.shape
    assert C == prepared["C"], "channel dim mismatch with prepared params"
    Ch = C // 2
    Cp, THp, nh = prepared["Cp"], prepared["THp"], prepared["nh"]
    Hp = prepared["Hp"]
    cap = prepared["vmem_cap"]
    x_bytes = x.dtype.itemsize

    TM = block_rows if block_rows is not None else _select_block_rows(
        T, THp, Cp, nh, cap, x_bytes)
    assert TM % 8 == 0, "row tile must be a multiple of 8 (sublane constraint)"

    # Pad T so row tiles never straddle a sequence boundary (padded rows are
    # computed and discarded; keeps the prev-row time-shift sideband exact).
    Tp = _round_up(T, TM)
    xp = x if Tp == T else jnp.pad(x, ((0, 0), (0, Tp - T), (0, 0)))
    x2d = xp.reshape(B * Tp, C)
    # TODO(synk): for C already a multiple of 128, carry the padded layout
    # between layers to avoid this pad and the trailing slice.
    if Cp != C:
        x2d = jnp.pad(x2d, ((0, 0), (0, Cp - C)))
    M = B * Tp
    num_m = M // TM  # note: keep this even on v7x for balanced 2-TC sharding

    # last row of each tile's predecessor; zero where the tile starts a sequence
    last = x2d[TM - 1::TM, :]                                   # (num_m, Cp)
    prev = jnp.concatenate([jnp.zeros((1, Cp), x2d.dtype), last[:-1]], axis=0)
    seq_start = (jnp.arange(num_m) * TM) % Tp == 0
    prev = jnp.where(seq_start[:, None], 0.0, prev).reshape(num_m, 1, Cp)

    kernel = functools.partial(channel_mix_kernel, ch=Ch)

    # Weight tiles are resident (single-buffered) when there is only one hidden
    # tile; otherwise they stream over the hidden axis with default buffering.
    def wspec(shape, idx):
        if nh == 1:
            return pl.BlockSpec(shape, idx, pipeline_mode=pl.Buffered(1))
        return pl.BlockSpec(shape, idx)

    flops = 2 * M * Cp * (2 * Hp + Cp) + 2 * M * Hp * Cp
    transcendentals = M * (Hp + Cp)
    bytes_accessed = (M * Cp * x_bytes + M * Cp * 4
                      + num_m * (Cp * 2 * Hp + Hp * Cp) * 2
                      + Cp * Cp * 2 + 4 * Cp * 4)

    out2d = pl.pallas_call(
        kernel,
        out_shape=jax.ShapeDtypeStruct((M, Cp), jnp.float32),
        grid=(num_m, nh),
        in_specs=[
            pl.BlockSpec((TM, Cp), lambda m, h: (m, 0)),          # x rows
            pl.BlockSpec((1, 1, Cp), lambda m, h: (m, 0, 0)),     # prev row sideband
            wspec((Cp, 2 * THp), lambda m, h: (0, h)),            # fused K|V weight tile
            wspec((1, 2 * THp), lambda m, h: (0, h)),             # fused K|V bias tile
            wspec((THp, Cp), lambda m, h: (h, 0)),                # output weight tile
            pl.BlockSpec((Cp, Cp), lambda m, h: (0, 0),           # receptance weight
                         pipeline_mode=pl.Buffered(1)),
            pl.BlockSpec((1, Cp), lambda m, h: (0, 0),            # receptance bias
                         pipeline_mode=pl.Buffered(1)),
            pl.BlockSpec((1, Cp), lambda m, h: (0, 0),            # output bias
                         pipeline_mode=pl.Buffered(1)),
        ],
        out_specs=pl.BlockSpec((TM, Cp), lambda m, h: (m, 0)),
        scratch_shapes=[pltpu.VMEM((TM, Cp), jnp.float32)],       # wkv accumulator
        compiler_params=pltpu.CompilerParams(
            dimension_semantics=("parallel", "arbitrary"),
            vmem_limit_bytes=int(cap),
        ),
        cost_estimate=pl.CostEstimate(
            flops=int(flops),
            transcendentals=int(transcendentals),
            bytes_accessed=int(bytes_accessed),
        ),
    )(x2d, prev, prepared["w_kv"], prepared["b_kv"], prepared["w_out"],
      prepared["w_r"], prepared["b_r"], prepared["b_out"])

    return out2d.reshape(B, Tp, Cp)[:, :T, :C]


# --------------------------------------------------------------------------- #
# Pure-JAX reference and parameter init (mirror the PyTorch module)
# --------------------------------------------------------------------------- #
def reference(x, params):
    B, T, C = x.shape
    Ch = C // 2
    shifted = jnp.concatenate(
        [jnp.zeros((B, 1, Ch), x.dtype), x[:, :-1, :Ch]], axis=1)
    xs = jnp.concatenate([shifted, x[:, :, Ch:]], axis=-1)
    k = xs @ params["wk"] + params["bk"]
    v = xs @ params["wv"] + params["bv"]
    r = xs @ params["wr"] + params["br"]
    wkv = (k * jnp.tanh(jax.nn.softplus(k)) * v) @ params["ww"] + params["bw"]
    return jax.nn.sigmoid(r) * wkv


def init_params(key, n_embd, n_ffn):
    hidden = 5 * n_ffn // 2
    ks = jax.random.split(key, 8)
    s_in = 1.0 / jnp.sqrt(n_embd)
    s_h = 1.0 / jnp.sqrt(hidden)
    return {
        # (in, out) layouts; biases kept 2D (1, out)
        "wk": jax.random.uniform(ks[0], (n_embd, hidden), jnp.float32, -s_in, s_in),
        "bk": jax.random.uniform(ks[1], (1, hidden), jnp.float32, -s_in, s_in),
        "wv": jax.random.uniform(ks[2], (n_embd, hidden), jnp.float32, -s_in, s_in),
        "bv": jax.random.uniform(ks[3], (1, hidden), jnp.float32, -s_in, s_in),
        "wr": jax.random.uniform(ks[4], (n_embd, n_embd), jnp.float32, -s_in, s_in),
        "br": jax.random.uniform(ks[5], (1, n_embd), jnp.float32, -s_in, s_in),
        "ww": jax.random.uniform(ks[6], (hidden, n_embd), jnp.float32, -s_h, s_h),
        "bw": jax.random.uniform(ks[7], (1, n_embd), jnp.float32, -s_h, s_h),
    }


if __name__ == "__main__":
    B, T = 2, 16
    n_embd, n_ffn = 32, 64            # hidden_sz = 5 * n_ffn // 2 = 160

    key = jax.random.PRNGKey(0)
    kx, kp = jax.random.split(key)
    x = jax.random.normal(kx, (B, T, n_embd), jnp.float32)
    params = init_params(kp, n_embd, n_ffn)
    ref = reference(x, params)

    # 1) default tiling: weights fully VMEM-resident and single-buffered.
    prepared = prepare_channel_mix_params(params)
    out = jax.block_until_ready(rwkv_channel_mix(x, prepared))
    assert out.shape == (B, T, n_embd)
    max_err = float(jnp.max(jnp.abs(out - ref)))
    assert jnp.allclose(out, ref, atol=3e-2, rtol=3e-2), \
        f"mismatch vs reference (max err {max_err})"

    # 2) small row tiles + hidden-dim tiling: exercises the cross-tile
    #    time-shift sideband and the hidden-axis accumulation path.
    prepared2 = prepare_channel_mix_params(params, block_hidden=128)
    out2 = jax.block_until_ready(rwkv_channel_mix(x, prepared2, block_rows=8))
    max_err2 = float(jnp.max(jnp.abs(out2 - ref)))
    assert jnp.allclose(out2, ref, atol=3e-2, rtol=3e-2), \
        f"mismatch vs reference, tiled path (max err {max_err2})"

    print("KERNEL_OK")
</pallas_src>

<mosaic_0001>
module attributes {stable_mosaic.version = 11 : i64} {
  func.func @channel_mix_kernel(%arg0: i32, %arg1: i32, %arg2: memref<16x128xf32, #tpu.memory_space<vmem>>, %arg3: memref<1x1x128xf32, #tpu.memory_space<vmem>>, %arg4: memref<128x512xbf16, #tpu.memory_space<vmem>>, %arg5: memref<1x512xf32, #tpu.memory_space<vmem>>, %arg6: memref<256x128xbf16, #tpu.memory_space<vmem>>, %arg7: memref<128x128xbf16, #tpu.memory_space<vmem>>, %arg8: memref<1x128xf32, #tpu.memory_space<vmem>>, %arg9: memref<1x128xf32, #tpu.memory_space<vmem>>, %arg10: memref<16x128xf32, #tpu.memory_space<vmem>>, %arg11: memref<16x128xf32, #tpu.memory_space<vmem>>) attributes {dimension_semantics = [#tpu.dimension_semantics<parallel>, #tpu.dimension_semantics<arbitrary>], iteration_bounds = array<i64: 2, 1>, scalar_prefetch = 0 : i64, scratch_operands = 1 : i64, tpu.core_type = #tpu.core_type<tc>, window_params = [{transform_indices = @transform_0, window_bounds = array<i64: 16, 128>}, {transform_indices = @transform_1, window_bounds = array<i64: 1, 1, 128>}, {pipeline_mode = #tpu.pipeline_mode<synchronous>, transform_indices = @transform_2, window_bounds = array<i64: 128, 512>}, {pipeline_mode = #tpu.pipeline_mode<synchronous>, transform_indices = @transform_3, window_bounds = array<i64: 1, 512>}, {pipeline_mode = #tpu.pipeline_mode<synchronous>, transform_indices = @transform_4, window_bounds = array<i64: 256, 128>}, {pipeline_mode = #tpu.pipeline_mode<synchronous>, transform_indices = @transform_5, window_bounds = array<i64: 128, 128>}, {pipeline_mode = #tpu.pipeline_mode<synchronous>, transform_indices = @transform_6, window_bounds = array<i64: 1, 128>}, {pipeline_mode = #tpu.pipeline_mode<synchronous>, transform_indices = @transform_7, window_bounds = array<i64: 1, 128>}, {transform_indices = @transform_8, window_bounds = array<i64: 16, 128>}]} {
    %c0 = arith.constant 0 : index
    %c0_0 = arith.constant 0 : index
    %0 = vector.load %arg2[%c0, %c0_0] : memref<16x128xf32, #tpu.memory_space<vmem>>, vector<16x128xf32>
    %c1_i32 = arith.constant 1 : i32
    %1 = tpu.dynamic_rotate %0 by %c1_i32 dim 0 : vector<16x128xf32>, i32 -> vector<16x128xf32>
    %2 = tpu.iota {dimensions = array<i32: 0>} : vector<16x128xi32>
    %3 = tpu.iota {dimensions = array<i32: 1>} : vector<16x128xi32>
    %c0_1 = arith.constant 0 : index
    %c0_2 = arith.constant 0 : index
    %c0_3 = arith.constant 0 : index
    %4 = vector.load %arg3[%c0_1, %c0_2, %c0_3] : memref<1x1x128xf32, #tpu.memory_space<vmem>>, vector<1x1x128xf32>
    %5 = vector.shape_cast %4 : vector<1x1x128xf32> to vector<1x128xf32>
    %6 = vector.shape_cast %5 : vector<1x128xf32> to vector<1x128xf32>
    %7 = vector.broadcast %6 : vector<1x128xf32> to vector<16x128xf32>
    %c0_i32 = arith.constant 0 : i32
    %8 = vector.broadcast %c0_i32 : i32 to vector<16x128xi32>
    %9 = arith.cmpi eq, %2, %8 : vector<16x128xi32>
    %10 = arith.select %9, %7, %1 : vector<16x128xi1>, vector<16x128xf32>
    %c16_i32 = arith.constant 16 : i32
    %11 = vector.broadcast %c16_i32 : i32 to vector<16x128xi32>
    %12 = arith.cmpi slt, %3, %11 : vector<16x128xi32>
    %13 = arith.select %12, %10, %0 : vector<16x128xi1>, vector<16x128xf32>
    %14 = arith.truncf %13 : vector<16x128xf32> to vector<16x128xbf16>
    %c0_i32_4 = arith.constant 0 : i32
    %15 = arith.cmpi eq, %arg1, %c0_i32_4 : i32
    %16 = arith.extui %15 : i1 to i32
    %c0_i32_5 = arith.constant 0 : i32
    %17 = arith.cmpi ne, %16, %c0_i32_5 : i32
    scf.if %17 {
      %cst_24 = arith.constant 0.000000e+00 : f32
      %49 = vector.broadcast %cst_24 : f32 to vector<16x128xf32>
      %c0_25 = arith.constant 0 : index
      %c0_26 = arith.constant 0 : index
      %50 = vector.load %arg11[%c0_25, %c0_26] : memref<16x128xf32, #tpu.memory_space<vmem>>, vector<16x128xf32>
      tpu.vector_store %arg11[%c0_25, %c0_26], %49 {strides = array<i32>} : memref<16x128xf32, #tpu.memory_space<vmem>>, vector<16x128xf32>,
    } else {
    }
    %c0_6 = arith.constant 0 : index
    %c0_7 = arith.constant 0 : index
    %18 = vector.load %arg4[%c0_6, %c0_7] : memref<128x512xbf16, #tpu.memory_space<vmem>>, vector<128x512xbf16>
    %cst = arith.constant dense<0.000000e+00> : vector<16x512xf32>
    %19 = tpu.matmul %14, %18, %cst {dimension_numbers = #tpu.dot_dimension_numbers<[1], [0], [0], [1], [0, 0, 1, 1], [], []>} : vector<16x128xbf16>, vector<128x512xbf16>, vector<16x512xf32> -> vector<16x512xf32>
    %c0_8 = arith.constant 0 : index
    %c0_9 = arith.constant 0 : index
    %20 = vector.load %arg5[%c0_8, %c0_9] : memref<1x512xf32, #tpu.memory_space<vmem>>, vector<1x512xf32>
    %21 = vector.broadcast %20 : vector<1x512xf32> to vector<16x512xf32>
    %22 = arith.addf %19, %21 : vector<16x512xf32>
    %23 = vector.extract_strided_slice %22 {offsets = [0, 0], sizes = [16, 256], strides = [1, 1]} : vector<16x512xf32> to vector<16x256xf32>
    %24 = vector.extract_strided_slice %22 {offsets = [0, 256], sizes = [16, 256], strides = [1, 1]} : vector<16x512xf32> to vector<16x256xf32>
    %cst_10 = arith.constant 3.000000e+01 : f32
    %25 = vector.broadcast %cst_10 : f32 to vector<16x256xf32>
    %26 = arith.minimumf %23, %25 : vector<16x256xf32>
    %27 = math.exp %26 : vector<16x256xf32>
    %cst_11 = arith.constant 1.000000e+00 : f32
    %28 = vector.broadcast %cst_11 : f32 to vector<16x256xf32>
    %29 = arith.addf %28, %27 : vector<16x256xf32>
    %cst_12 = arith.constant 1.000000e+00 : f32
    %30 = vector.broadcast %cst_12 : f32 to vector<16x256xf32>
    %31 = arith.addf %30, %27 : vector<16x256xf32>
    %32 = arith.mulf %29, %31 : vector<16x256xf32>
    %cst_13 = arith.constant 1.000000e+00 : f32
    %33 = vector.broadcast %cst_13 : f32 to vector<16x256xf32>
    %34 = arith.subf %32, %33 : vector<16x256xf32>
    %35 = arith.mulf %23, %34 : vector<16x256xf32>
    %cst_14 = arith.constant 1.000000e+00 : f32
    %36 = vector.broadcast %cst_14 : f32 to vector<16x256xf32>
    %37 = arith.addf %32, %36 : vector<16x256xf32>
    %38 = arith.divf %35, %37 : vector<16x256xf32>
    %39 = arith.mulf %38, %24 : vector<16x256xf32>
    %40 = arith.truncf %39 : vector<16x256xf32> to vector<16x256xbf16>
    %c0_15 = arith.constant 0 : index
    %c0_16 = arith.constant 0 : index
    %41 = vector.load %arg11[%c0_15, %c0_16] : memref<16x128xf32, #tpu.memory_space<vmem>>, vector<16x128xf32>
    %c0_17 = arith.constant 0 : index
    %c0_18 = arith.constant 0 : index
    %42 = vector.load %arg6[%c0_17, %c0_18] : memref<256x128xbf16, #tpu.memory_space<vmem>>, vector<256x128xbf16>
    %cst_19 = arith.constant dense<0.000000e+00> : vector<16x128xf32>
    %43 = tpu.matmul %40, %42, %cst_19 {dimension_numbers = #tpu.dot_dimension_numbers<[1], [0], [0], [1], [0, 0, 1, 1], [], []>} : vector<16x256xbf16>, vector<256x128xbf16>, vector<16x128xf32> -> vector<16x128xf32>
    %44 = arith.addf %41, %43 : vector<16x128xf32>
    %c0_20 = arith.constant 0 : index
    %c0_21 = arith.constant 0 : index
    %45 = vector.load %arg11[%c0_20, %c0_21] : memref<16x128xf32, #tpu.memory_space<vmem>>, vector<16x128xf32>
    tpu.vector_store %arg11[%c0_20, %c0_21], %44 {strides = array<i32>} : memref<16x128xf32, #tpu.memory_space<vmem>>, vector<16x128xf32>,
    %c0_i32_22 = arith.constant 0 : i32
    %46 = arith.cmpi eq, %arg1, %c0_i32_22 : i32
    %47 = arith.extui %46 : i1 to i32
    %c0_i32_23 = arith.constant 0 : i32
    %48 = arith.cmpi ne, %47, %c0_i32_23 : i32
    scf.if %48 {
      %c0_24 = arith.constant 0 : index
      %c0_25 = arith.constant 0 : index
      %49 = vector.load %arg7[%c0_24, %c0_25] : memref<128x128xbf16, #tpu.memory_space<vmem>>, vector<128x128xbf16>
      %cst_26 = arith.constant dense<0.000000e+00> : vector<16x128xf32>
      %50 = tpu.matmul %14, %49, %cst_26 {dimension_numbers = #tpu.dot_dimension_numbers<[1], [0], [0], [1], [0, 0, 1, 1], [], []>} : vector<16x128xbf16>, vector<128x128xbf16>, vector<16x128xf32> -> vector<16x128xf32>
      %c0_27 = arith.constant 0 : index
      %c0_28 = arith.constant 0 : index
      %51 = vector.load %arg8[%c0_27, %c0_28] : memref<1x128xf32, #tpu.memory_space<vmem>>, vector<1x128xf32>
      %52 = vector.broadcast %51 : vector<1x128xf32> to vector<16x128xf32>
      %53 = arith.addf %50, %52 : vector<16x128xf32>
      %c0_29 = arith.constant 0 : index
      %c0_30 = arith.constant 0 : index
      %54 = vector.load %arg11[%c0_29, %c0_30] : memref<16x128xf32, #tpu.memory_space<vmem>>, vector<16x128xf32>
      %c0_31 = arith.constant 0 : index
      %c0_32 = arith.constant 0 : index
      %55 = vector.load %arg9[%c0_31, %c0_32] : memref<1x128xf32, #tpu.memory_space<vmem>>, vector<1x128xf32>
      %56 = vector.broadcast %55 : vector<1x128xf32> to vector<16x128xf32>
      %57 = arith.addf %54, %56 : vector<16x128xf32>
      %58 = arith.negf %53 : vector<16x128xf32>
      %59 = math.exp %58 : vector<16x128xf32>
      %cst_33 = arith.constant 1.000000e+00 : f32
      %60 = vector.broadcast %cst_33 : f32 to vector<16x128xf32>
      %61 = arith.addf %60, %59 : vector<16x128xf32>
      %62 = arith.divf %60, %61 : vector<16x128xf32>
      %63 = arith.mulf %62, %57 : vector<16x128xf32>
      %c0_34 = arith.constant 0 : index
      %c0_35 = arith.constant 0 : index
      %64 = vector.load %arg10[%c0_34, %c0_35] : memref<16x128xf32, #tpu.memory_space<vmem>>, vector<16x128xf32>
      tpu.vector_store %arg10[%c0_34, %c0_35], %63 {strides = array<i32>} : memref<16x128xf32, #tpu.memory_space<vmem>>, vector<16x128xf32>,
    } else {
    }
    return
  }
  func.func @transform_0(%arg0: i32, %arg1: i32) -> (i32, i32) {
    %c0_i32 = arith.constant 0 : i32
    %c0_i32_0 = arith.constant 0 : i32
    return %arg0, %c0_i32 : i32, i32
  }
  func.func @transform_1(%arg0: i32, %arg1: i32) -> (i32, i32, i32) {
    %c0_i32 = arith.constant 0 : i32
    %c0_i32_0 = arith.constant 0 : i32
    %c0_i32_1 = arith.constant 0 : i32
    return %arg0, %c0_i32, %c0_i32_0 : i32, i32, i32
  }
  func.func @transform_2(%arg0: i32, %arg1: i32) -> (i32, i32) {
    %c0_i32 = arith.constant 0 : i32
    %c0_i32_0 = arith.constant 0 : i32
    return %c0_i32, %arg1 : i32, i32
  }
  func.func @transform_3(%arg0: i32, %arg1: i32) -> (i32, i32) {
    %c0_i32 = arith.constant 0 : i32
    %c0_i32_0 = arith.constant 0 : i32
    return %c0_i32, %arg1 : i32, i32
  }
  func.func @transform_4(%arg0: i32, %arg1: i32) -> (i32, i32) {
    %c0_i32 = arith.constant 0 : i32
    %c0_i32_0 = arith.constant 0 : i32
    return %arg1, %c0_i32 : i32, i32
  }
  func.func @transform_5(%arg0: i32, %arg1: i32) -> (i32, i32) {
    %c0_i32 = arith.constant 0 : i32
    %c0_i32_0 = arith.constant 0 : i32
    %c0_i32_1 = arith.constant 0 : i32
    return %c0_i32, %c0_i32_0 : i32, i32
  }
  func.func @transform_6(%arg0: i32, %arg1: i32) -> (i32, i32) {
    %c0_i32 = arith.constant 0 : i32
    %c0_i32_0 = arith.constant 0 : i32
    %c0_i32_1 = arith.constant 0 : i32
    return %c0_i32, %c0_i32_0 : i32, i32
  }
  func.func @transform_7(%arg0: i32, %arg1: i32) -> (i32, i32) {
    %c0_i32 = arith.constant 0 : i32
    %c0_i32_0 = arith.constant 0 : i32
    %c0_i32_1 = arith.constant 0 : i32
    return %c0_i32, %c0_i32_0 : i32, i32
  }
  func.func @transform_8(%arg0: i32, %arg1: i32) -> (i32, i32) {
    %c0_i32 = arith.constant 0 : i32
    %c0_i32_0 = arith.constant 0 : i32
    return %arg0, %c0_i32 : i32, i32
  }
}

</mosaic_0001>

<bundles_post_ra>
// kernel: tpu_custom_call.1
= control target key start
LH: loop header
LB: loop body
LE: loop exit
PB: predicated region body
PF: predicated region fallthrough
CT: control target
= control target key end

     0   :  { %s2545_s0 = inlined_call_operand.hbm [shape: f32[32,128], index: 0, kind: input, shape index: {}]   ;;  %s2546_s1 = inlined_call_operand.hbm [shape: f32[2,1,128], index: 1, kind: input, shape index: {}]   ;;  %s2547_s2 = inlined_call_operand.hbm [shape: bf16[128,512], index: 2, kind: input, shape index: {}]   ;;  %s2548_s3 = inlined_call_operand.hbm [shape: f32[1,512], index: 3, kind: input, shape index: {}]   ;;  %s2549_s4 = inlined_call_operand.hbm [shape: bf16[256,128], index: 4, kind: input, shape index: {}]   ;;  %s2550_s5 = inlined_call_operand.hbm [shape: bf16[128,128], index: 5, kind: input, shape index: {}]   ;;  %s2551_s6 = inlined_call_operand.hbm [shape: f32[1,128], index: 6, kind: input, shape index: {}]   ;;  %s2552_s7 = inlined_call_operand.hbm [shape: f32[1,128], index: 7, kind: input, shape index: {}]   ;;  %s2553_s8 = inlined_call_operand.hbm [shape: f32[32,128], index: 8, kind: output, shape index: {}]  }
   0x1   :  { %2559 = sst [smem:[#allocation25_spill]] %s2545_s0 }
   0x2   :  { %2560 = sst [smem:[#allocation26_spill]] %s2547_s2 }
   0x3   :  { %2561 = sst [smem:[#allocation27_spill]] %s2548_s3 }
   0x4   :  { %2562 = sst [smem:[#allocation28_spill]] %s2549_s4 }
   0x5   :  { %2563 = sst [smem:[#allocation29_spill]] %s2550_s5 }
   0x6   :  { %2564 = sst [smem:[#allocation30_spill]] %s2551_s6 }
   0x7   :  { %2565 = sst [smem:[#allocation31_spill]] %s2553_s8 }
   0x8   :  { %13 = vsyncpa [#allocation4], 0 }
   0x9   :  { %15 = vsyncpa [#allocation4 + $0x1], 0 }
   0xa   :  { %16 = vsyncpa [#allocation7], 0 }
   0xb   :  { %18 = vsyncpa [#allocation7 + $0x1], 0 }
   0xc   :  { %19 = vsyncpa [#allocation10], 0 }
   0xd   :  { %20 = vsyncpa [#allocation13], 0 }
   0xe   :  { %21 = vsyncpa [#allocation16], 0 }
   0xf   :  { %22 = vsyncpa [#allocation5], 0 }
  0x10   :  { %24 = vsyncpa [#allocation5 + $0x1], 0  ;;  %s2133_s27 = smov 0   ;;  %s2135_s28 = smov 0  }
  0x11   :  { %s2137_s29 = smov 0   ;;  %s2139_s30 = smov 0  }
  0x12   :  { %s2141_s9 = smov 0   ;;  %s2143_s10 = smov 0  }
  0x13 LB: > { %s2164_s11 = sadd.s32 4294967295, %s2066_s10   ;;  %p1357_p0 = scmp.ge.s32.totalorder %s2066_s10, 1  ;;  %s2066_s10 = sphi %s2143_s10, %s30_s10   ;;  %s2062_s9 = sphi %s2141_s9, %s2599_s9   ;;  %s2058_s30 = sphi %s2139_s30, %s2598_s30   ;;  %s2054_s29 = sphi %s2137_s29, %s2597_s29   ;;  %s2050_s28 = sphi %s2135_s28, %s2596_s28   ;;  %s2046_s27 = sphi %s2133_s27, %s2595_s27  }
  0x14   : > { %p2555_p1 = scmp.eq.s32.totalorder %s2164_s11, 0  ;;  %p266_p2 = scmp.lt.s32.totalorder %s2066_s10, 3 }
  0x15   : > { %s2068_s13 = smov [#allocation8]   ;;  %s2069_s16 = smov [#allocation9]  }
  0x16   : > { %p2169_p3 = pnand %p1357_p0, %p266_p2  ;;  %s281_s14 = sshll.u32 %s2068_s13, 4  ;;  %s2173_s14 = int_to_ptr.vmem [resolvable:$true] %s281_s14 }
  0x17   : > { %s298_s17 = sshll.u32 %s2069_s16, 4  ;;  %s2568_s2 = sld [smem:[#allocation26_spill]]  ;;  %s2184_s17 = int_to_ptr.vmem [resolvable:$true] %s298_s17 }
  0x18   : > { %s2566_s12 = scalar_select %p2169_p3, 1, 0 }
  0x19   : > { %p1531_p4 = pneg %p2169_p3 }
  0x1b   : > { %p2180_p6 = pnand %p1531_p4, %p2555_p1 }
  0x1d   : > { %s1736_s20 = scalar_lea.hbm %s2568_s2, 4096  ;;  %p2194_p8 = pneg %p2180_p6 }
  0x1e   : > { %p1737_p7 = scmp.ne.s32.totalorder %s2568_s2, %s1736_s20  ;;  %p1743_p11 = scmp.lt.u32.totalorder %s1736_s20, %s2568_s2 }
  0x20   : > { %p1739_p9 = pnand %p2194_p8, %p1737_p7 }
  0x22   : > { %p1740_p10 = pneg %p1739_p9 }
  0x24   : > { %p1745_p12 = pnand %p1743_p11, %p1740_p10 }
  0x26   : > { %1748 = shalt.err (!%p1745_p12)
}
  0x27   : > { %s1749_s26 = scalar_lea.vmem %s2173_s14, 4096  ;;  %p1757_p4 = scmp.lt.s32.totalorder %s2173_s14, %s2173_s14 }
  0x28   : > { %p1750_p13 = scmp.ne.s32.totalorder %s2173_s14, %s1749_s26  ;;  %p1758_p5 = scmp.lt.s32.totalorder %s1749_s26, %s1749_s26 }
  0x2a   : > { %p1752_p0 = pnand %p1750_p13, %p2194_p8  ;;  %p1759_p7 = por %p1758_p5, %p1757_p4 }
  0x2c   : > { %p1753_p2 = pneg %p1752_p0 }
  0x2e   : > { %p1760_p9 = pnand %p1759_p7, %p1753_p2 }
  0x30   : > { %1763 = shalt.err (!%p1760_p9)
}
  0x31   : > { %s2070_s13 = smov 256   ;;  %s2071_s16 = smov 16  }
  0x32   : > { %1534 = dma.hbm_to_vmem [thread:$0]  (!%p2180_p6), %s2568_s2, 4096, %s2173_s14, [#allocation7], %s2070_s13, %s2070_s13, %s2071_s16  }
  0x33   : > { %s2570_s3 = sld [smem:[#allocation27_spill]] }
  0x39   : > { %s1764_s22 = scalar_lea.hbm %s2570_s3, 64 }
  0x3a   : > { %p1765_p5 = scmp.ne.s32.totalorder %s2570_s3, %s1764_s22  ;;  %p1771_p12 = scmp.lt.u32.totalorder %s1764_s22, %s2570_s3 }
  0x3c   : > { %p1767_p10 = pnand %p1765_p5, %p2194_p8 }
  0x3e   : > { %p1768_p11 = pneg %p1767_p10 }
  0x40   : > { %p1773_p13 = pnand %p1771_p12, %p1768_p11 }
  0x42   : > { %1776 = shalt.err (!%p1773_p13)
}
  0x43   : > { %s1777_s14 = scalar_lea.vmem %s2184_s17, 64  ;;  %p1785_p7 = scmp.lt.s32.totalorder %s2184_s17, %s2184_s17 }
  0x44   : > { %p1778_p0 = scmp.ne.s32.totalorder %s2184_s17, %s1777_s14  ;;  %p1786_p9 = scmp.lt.s32.totalorder %s1777_s14, %s1777_s14 }
  0x46   : > { %p1780_p2 = pnand %p1778_p0, %p2194_p8  ;;  %p1787_p5 = por %p1786_p9, %p1785_p7 }
  0x48   : > { %p1781_p4 = pneg %p1780_p2 }
  0x4a   : > { %p1788_p10 = pnand %p1787_p5, %p1781_p4 }
  0x4c   : > { %1791 = shalt.err (!%p1788_p10)
}
  0x4d   : > { %1537 = dma.hbm_to_vmem [thread:$0]  (!%p2180_p6), %s2570_s3, 64, %s2184_s17, [#allocation10]  }
  0x4e   : > { %s2072_s16 = smov [#allocation12]   ;;  %s2073_s19 = smov [#allocation11]  }
  0x4f   : > { %s324_s18 = sshll.u32 %s2072_s16, 4  ;;  %s311_s20 = sshll.u32 %s2073_s19, 4  ;;  %s325_s18 = int_to_ptr.vmem [resolvable:$true] %s324_s18  ;;  %s2238_s20 = int_to_ptr.vmem [resolvable:$true] %s311_s20 }
  0x50   : > { %s2571_s5 = sld [smem:[#allocation29_spill]] }
  0x56   : > { %s1792_s24 = scalar_lea.hbm %s2571_s5, 1024 }
  0x57   : > { %p1793_p11 = scmp.ne.s32.totalorder %s2571_s5, %s1792_s24  ;;  %p1799_p0 = scmp.lt.u32.totalorder %s1792_s24, %s2571_s5 }
  0x59   : > { %p1795_p12 = pnand %p1793_p11, %p2194_p8 }
  0x5b   : > { %p1796_p13 = pneg %p1795_p12 }
  0x5d   : > { %p1801_p2 = pnand %p1799_p0, %p1796_p13 }
  0x5f   : > { %1804 = shalt.err (!%p1801_p2)
}
  0x60   : > { %s1805_s8 = scalar_lea.vmem %s325_s18, 1024  ;;  %p1813_p5 = scmp.lt.s32.totalorder %s325_s18, %s325_s18 }
  0x61   : > { %p1806_p4 = scmp.ne.s32.totalorder %s325_s18, %s1805_s8  ;;  %p1814_p10 = scmp.lt.s32.totalorder %s1805_s8, %s1805_s8 }
  0x63   : > { %p1808_p7 = pnand %p1806_p4, %p2194_p8  ;;  %p1815_p1 = por %p1814_p10, %p1813_p5 }
  0x65   : > { %p1809_p9 = pneg %p1808_p7 }
  0x67   : > { %p1816_p3 = pnand %p1815_p1, %p1809_p9 }
  0x69   : > { %1819 = shalt.err (!%p1816_p3)
}
  0x6a   : > { %s2074_s13 = smov 64   ;;  %s2075_s16 = smov 4  }
  0x6b   : > { %1543 = dma.hbm_to_vmem [thread:$0]  (!%p2180_p6), %s2571_s5, 1024, %s325_s18, [#allocation13], %s2074_s13, %s2074_s13, %s2075_s16  }
  0x6c   : > { %s2572_s4 = sld [smem:[#allocation28_spill]] }
  0x72   : > { %s1820_s25 = scalar_lea.hbm %s2572_s4, 2048 }
  0x73   : > { %p1821_p11 = scmp.ne.s32.totalorder %s2572_s4, %s1820_s25  ;;  %p1827_p12 = scmp.lt.u32.totalorder %s1820_s25, %s2572_s4 }
  0x75   : > { %p1823_p1 = pnand %p1821_p11, %p2194_p8 }
  0x77   : > { %p1824_p3 = pneg %p1823_p1 }
  0x79   : > { %p1829_p13 = pnand %p1827_p12, %p1824_p3 }
  0x7b   : > { %1832 = shalt.err (!%p1829_p13)
}
  0x7c   : > { %s1833_s18 = scalar_lea.vmem %s2238_s20, 2048  ;;  %p1841_p7 = scmp.lt.s32.totalorder %s2238_s20, %s2238_s20 }
  0x7d   : > { %p1834_p0 = scmp.ne.s32.totalorder %s2238_s20, %s1833_s18  ;;  %p1842_p9 = scmp.lt.s32.totalorder %s1833_s18, %s1833_s18 }
  0x7f   : > { %p1836_p2 = pnand %p1834_p0, %p2194_p8  ;;  %p1843_p5 = por %p1842_p9, %p1841_p7 }
  0x81   : > { %p1837_p4 = pneg %p1836_p2 }
  0x83   : > { %p1844_p10 = pnand %p1843_p5, %p1837_p4 }
  0x85   : > { %1847 = shalt.err (!%p1844_p10)
}
  0x86   : > { %1540 = dma.hbm_to_vmem [thread:$0]  (!%p2180_p6), %s2572_s4, 2048, %s2238_s20, [#allocation10], %s2074_s13, %s2074_s13, %s2075_s16  }
  0x87   : > { %s2076_s22 = smov [#allocation14]   ;;  %s2077_s25 = smov [#allocation15]  }
  0x88   : > { %s338_s24 = sshll.u32 %s2076_s22, 4  ;;  %s349_s26 = sshll.u32 %s2077_s25, 4  ;;  %s339_s24 = int_to_ptr.vmem [resolvable:$true] %s338_s24  ;;  %s2281_s26 = int_to_ptr.vmem [resolvable:$true] %s349_s26 }
  0x89   : > { %s2573_s6 = sld [smem:[#allocation30_spill]] }
  0x8f   : > { %s1848_s8 = scalar_lea.hbm %s2573_s6, 16 }
  0x90   : > { %p1849_p11 = scmp.ne.s32.totalorder %s2573_s6, %s1848_s8  ;;  %p1855_p12 = scmp.lt.u32.totalorder %s1848_s8, %s2573_s6 }
  0x92   : > { %p1851_p1 = pnand %p1849_p11, %p2194_p8 }
  0x94   : > { %p1852_p3 = pneg %p1851_p1 }
  0x96   : > { %p1857_p13 = pnand %p1855_p12, %p1852_p3 }
  0x98   : > { %1860 = shalt.err (!%p1857_p13)
}
  0x99   : > { %s1861_s13 = scalar_lea.vmem %s339_s24, 16  ;;  %s1868_s16 = scalar_lea.vmem %s339_s24, 32 }
  0x9a   : > { %p1862_p0 = scmp.ne.s32.totalorder %s339_s24, %s1861_s13  ;;  %p1869_p7 = scmp.lt.s32.totalorder %s339_s24, %s339_s24 }
  0x9b   : > { %p1870_p9 = scmp.lt.s32.totalorder %s1868_s16, %s1861_s13 }
  0x9c   : > { %p1864_p2 = pnand %p1862_p0, %p2194_p8 }
  0x9d   : > { %p1871_p5 = por %p1870_p9, %p1869_p7 }
  0x9e   : > { %p1865_p4 = pneg %p1864_p2 }
  0xa0   : > { %p1872_p10 = pnand %p1871_p5, %p1865_p4 }
  0xa2   : > { %1875 = shalt.err (!%p1872_p10)
}
  0xa3   : > { %1546 = dma.hbm_to_vmem [thread:$0]  (!%p2180_p6), %s2573_s6, 16, %s339_s24, [#allocation13]  }
  0xa4   : > { %s1876_s14 = scalar_lea.hbm %s2552_s7, 16 }
  0xa5   : > { %p1877_p11 = scmp.ne.s32.totalorder %s2552_s7, %s1876_s14  ;;  %p1883_p12 = scmp.lt.u32.totalorder %s1876_s14, %s2552_s7 }
  0xa7   : > { %p1879_p1 = pnand %p1877_p11, %p2194_p8 }
  0xa9   : > { %p1880_p3 = pneg %p1879_p1 }
  0xab   : > { %p1885_p13 = pnand %p1883_p12, %p1880_p3 }
  0xad   : > { %1888 = shalt.err (!%p1885_p13)
}
  0xae   : > { %s1889_s24 = scalar_lea.vmem %s2281_s26, 16  ;;  %s1896_s20 = scalar_lea.vmem %s2281_s26, 32 }
  0xaf   : > { %p1890_p0 = scmp.ne.s32.totalorder %s2281_s26, %s1889_s24  ;;  %p1897_p7 = scmp.lt.s32.totalorder %s2281_s26, %s2281_s26 }
  0xb0   : > { %p1898_p9 = scmp.lt.s32.totalorder %s1896_s20, %s1889_s24 }
  0xb1   : > { %p1892_p2 = pnand %p1890_p0, %p2194_p8 }
  0xb2   : > { %p1899_p5 = por %p1898_p9, %p1897_p7 }
  0xb3   : > { %p1893_p4 = pneg %p1892_p2 }
  0xb5   : > { %p1900_p10 = pnand %p1899_p5, %p1893_p4 }
  0xb7   : > { %1903 = shalt.err (!%p1900_p10)
}
  0xb8   : > { %1549 = dma.hbm_to_vmem [thread:$0]  (!%p2180_p6), %s2552_s7, 16, %s2281_s26, [#allocation16]  }
  0xb9   : > { %s1356_s23 = sadd.s32 4294967294, %s2066_s10   ;;  %s42_s2 = sadd.s32 1, %s2062_s9 }
  0xba   : > { %p44_p8 = scmp.ge.s32.totalorder %s42_s2, 2  ;;  %s49_s15 = sadd.s32 1, %s2054_s29 }
  0xbb   : > { %p56_p11 = scmp.ne.s32.totalorder %s2054_s29, %s2050_s28  ;;  %p57_p1 = scmp.eq.s32.totalorder %s2066_s10, 0 }
  0xbc   : > { %s2601_s2 = smov (%p44_p8, %s42_s2), 0  ;;  %p62_p12 = scmp.ne.s32.totalorder %s2050_s28, %s2046_s27 }
  0xbd   : > { %p2333_p3 = por %p57_p1, %p56_p11  ;;  %s46_s26 = ssub.s32 %s2062_s9, %s2601_s2 }
  0xbe   : > { %p253_p6 = scmp.eq.s32.totalorder %s2164_s11, 1  ;;  %p47_p13 = scmp.eq.s32.totalorder %s46_s26, 0 }
  0xbf   : > { %p2575_p0 = scmp.eq.s32.totalorder %s2164_s11, 0  ;;  %p259_p7 = scmp.eq.s32.totalorder %s1356_s23, 1 }
  0xc0   : > { %p2348_p4 = por %p253_p6, %p56_p11  ;;  %p1567_p5 = scmp.lt.s32.totalorder %s2066_s10, 2 }
  0xc1   : > { %p2344_p2 = por %p2575_p0, %p62_p12  ;;  %p2355_p9 = por %p259_p7, %p62_p12 }
  0xc2   : > { %s2577_s25 = scalar_select %p2348_p4, 1, 0 }
  0xc3   : > { %s2576_s22 = scalar_select %p2344_p2, 1, 0 }
  0xc4   : > { %s2353_s14 = scalar_select %p47_p13, %s2054_s29, %s49_s15  }
  0xc5   : > { %s2578_s17 = scalar_select %p2355_p9, 1, 0 }
  0xc6   : > { %s2361_s8 = sand.u32 1, %s2054_s29   ;;  %s1448_s18 = sshll.u32 %s2062_s9, 8 }
  0xc7   : > { %s1365_s19 = sshll.u32 %s2361_s8, 4  ;;  %s2579_s0 = sld [smem:[#allocation25_spill]] }
  0xc8   : > { %s364_s16 = scalar_lea.vmem [#allocation3], %s1365_s19  ;;  %p2372_p10 = pnand %p1567_p5, %p2333_p3 }
  0xc9   : > { %s371_s23 = sshll.u32 %s364_s16, 4  ;;  %s361_s26 = scalar_lea.sflag [#allocation4], %s2361_s8  ;;  %s2376_s23 = int_to_ptr.vmem [resolvable:$true] %s371_s23 }
  0xca   : > { %p1906_p11 = pneg %p2372_p10 }
  0xcd   : > { %s2368_s13 = scalar_lea.hbm %s2579_s0, %s1448_s18  ;;  %s1909_s21 = scalar_lea.hbm %s2579_s0, 512 }
  0xce   : > { %s1904_s3 = scalar_lea.hbm %s2368_s13, 256  ;;  %p1910_p3 = scmp.lt.u32.totalorder %s2368_s13, %s2579_s0 }
  0xcf   : > { %p1905_p8 = scmp.ne.s32.totalorder %s2368_s13, %s1904_s3  ;;  %p1911_p6 = scmp.lt.u32.totalorder %s1909_s21, %s1904_s3 }
  0xd0   : > { %p1913_p0 = scmp.lt.u32.totalorder %s1904_s3, %s2368_s13 }
  0xd1   : > { %p1907_p1 = pnand %p1906_p11, %p1905_p8  ;;  %p1912_p13 = por %p1911_p6, %p1910_p3 }
  0xd3   : > { %p1908_p12 = pneg %p1907_p1  ;;  %p1914_p7 = por %p1913_p0, %p1912_p13 }
  0xd5   : > { %p1915_p5 = pnand %p1914_p7, %p1908_p12 }
  0xd7   : > { %1918 = shalt.err (!%p1915_p5)
}
  0xd8   : > { %s1919_s16 = scalar_lea.vmem %s2376_s23, 256  ;;  %s2078_s18 = smov [#allocation3]  }
  0xd9   : > { %p1920_p8 = scmp.ne.s32.totalorder %s2376_s23, %s1919_s16  ;;  %s1924_s19 = sshll.u32 %s2078_s18, 4  ;;  %s1925_s19 = int_to_ptr.vmem [resolvable:$false] %s1924_s19 }
  0xda   : > { %s1926_s24 = scalar_lea.vmem %s1925_s19, 512  ;;  %p1927_p4 = scmp.lt.s32.totalorder %s2376_s23, %s1925_s19 }
  0xdb   : > { %p1922_p1 = pnand %p1920_p8, %p1906_p11  ;;  %p1928_p3 = scmp.lt.s32.totalorder %s1926_s24, %s1919_s16 }
  0xdd   : > { %p1923_p9 = pneg %p1922_p1  ;;  %p1929_p6 = por %p1928_p3, %p1927_p4 }
  0xdf   : > { %p1930_p13 = pnand %p1929_p6, %p1923_p9 }
  0xe1   : > { %1933 = shalt.err (!%p1930_p13)
}
  0xe2   : > { %s2079_s3 = smov 128   ;;  %s2080_s21 = smov 8  }
  0xe3   : > { %1553 = dma.hbm_to_vmem [thread:$0]  (!%p2372_p10), %s2368_s13, 256, %s2376_s23, %s361_s26, %s2079_s3, %s2079_s3, %s2080_s21  }
  0xe4   : > { %s381_s20 = sand.u32 1, %s2066_s10   ;;  %s1368_s18 = sshll.u32 %s2062_s9, 4 }
  0xe5   : > { %s2411_s24 = scalar_lea.hbm %s2546_s1, %s1368_s18  ;;  %s384_s0 = scalar_lea.vmem [#allocation6], %s2361_s8 }
  0xe6   : > { %s391_s4 = sshll.u32 %s384_s0, 4  ;;  %s382_s5 = scalar_lea.sflag [#allocation7], %s381_s20  ;;  %s392_s4 = int_to_ptr.vmem [resolvable:$true] %s391_s4 }
  0xe7   : > { %s1934_s6 = scalar_lea.hbm %s2411_s24, 16  ;;  %s1939_s26 = scalar_lea.hbm %s2546_s1, 32 }
  0xe8   : > { %p1935_p4 = scmp.ne.s32.totalorder %s2411_s24, %s1934_s6  ;;  %p1940_p0 = scmp.lt.u32.totalorder %s2411_s24, %s2546_s1 }
  0xe9   : > { %p1941_p7 = scmp.lt.u32.totalorder %s1939_s26, %s1934_s6  ;;  %p1943_p8 = scmp.lt.u32.totalorder %s1934_s6, %s2411_s24 }
  0xea   : > { %p1937_p9 = pnand %p1935_p4, %p1906_p11 }
  0xeb   : > { %p1942_p5 = por %p1941_p7, %p1940_p0 }
  0xec   : > { %p1938_p12 = pneg %p1937_p9 }
  0xed   : > { %p1944_p1 = por %p1943_p8, %p1942_p5 }
  0xef   : > { %p1945_p3 = pnand %p1944_p1, %p1938_p12 }
  0xf1   : > { %1948 = shalt.err (!%p1945_p3)
}
  0xf2   : > { %s1949_s0 = scalar_lea.vmem %s392_s4, 16  ;;  %s2081_s8 = smov [#allocation6]  }
  0xf3   : > { %p1950_p6 = scmp.ne.s32.totalorder %s392_s4, %s1949_s0  ;;  %s1954_s20 = sshll.u32 %s2081_s8, 4  ;;  %s1955_s20 = int_to_ptr.vmem [resolvable:$false] %s1954_s20 }
  0xf4   : > { %s1956_s18 = scalar_lea.vmem %s1955_s20, 32  ;;  %p1957_p9 = scmp.lt.s32.totalorder %s392_s4, %s1955_s20 }
  0xf5   : > { %p1952_p13 = pnand %p1950_p6, %p1906_p11  ;;  %p1958_p2 = scmp.lt.s32.totalorder %s1956_s18, %s1949_s0 }
  0xf7   : > { %p1953_p4 = pneg %p1952_p13  ;;  %p1959_p0 = por %p1958_p2, %p1957_p9 }
  0xf9   : > { %p1960_p7 = pnand %p1959_p0, %p1953_p4 }
  0xfb   : > { %1963 = shalt.err (!%p1960_p7)
}
  0xfc   : > { %1556 = dma.hbm_to_vmem [thread:$0]  (!%p2372_p10), %s2411_s24, 16, %s392_s4, %s382_s5  }
  0xfd   : > { %p2581_p12 = scmp.ne.s32.totalorder %s2566_s12, 0 }
  0xfe   : > { %s2436_s6 = sand.u32 (!%p2581_p12), 1, %s2050_s28   ;;  %p2582_p2 = scmp.ne.s32.totalorder (!%p2581_p12), %s2576_s22, 0 }
  0xff   : > { %400 = sbr.rel (%p2581_p12) target bundleno = 804 (0x324), region = 52  ;;  %s1370_s19 = sshll.u32 (!%p2581_p12), %s2436_s6, 4 }
 0x100   : > { %s403_s16 = scalar_lea.sflag (!%p2581_p12), [#allocation4], %s2436_s6  ;;  %s2442_s13 = scalar_lea.vmem (!%p2581_p12), [#allocation3], %s1370_s19 }
 0x106   : > { %2017 = dma.done.wait (%p2582_p2), %s403_s16, 256  }
 0x107   : > { %2019 = vsyncadd (%p2582_p2), %s403_s16, 4294967040  ;;  %s411_s4 = sand.u32 1, %s2164_s11   ;;  %s414_s12 = scalar_lea.vmem [#allocation6], %s2436_s6 }
 0x108   : > { %s412_s5 = scalar_lea.sflag [#allocation7], %s411_s4 }
 0x109   : > { %2021 = dma.done.wait (%p2582_p2), %s412_s5, 16  }
 0x10a   : > { %2023 = vsyncadd (%p2582_p2), %s412_s5, 4294967280  ;;  %p2583_p10 = scmp.eq.s32.totalorder %s2164_s11, 0 }
 0x10c   : > { %2025 = dma.done.wait (%p2583_p10), [#allocation7], 4096   ;;  %p2584_p11 = pmov %p2583_p10 }
 0x10d   : > { %p2585_p5 = pmov %p2583_p10 }
 0x10e   : > { %2027 = vsyncadd (%p2584_p11), [#allocation7], 4294963200 }
 0x10f   : > { %2029 = dma.done.wait (%p2585_p5), [#allocation10], 2112   ;;  %p2586_p8 = pmov %p2585_p5 }
 0x110   : > { %p2587_p1 = pmov %p2585_p5 }
 0x111   : > { %2031 = vsyncadd (%p2586_p8), [#allocation10], 4294965184 }
 0x112   : > { %2033 = dma.done.wait (%p2587_p1), [#allocation13], 1040   ;;  %p2588_p3 = pmov %p2587_p1 }
 0x113   : > { %p2589_p6 = pmov %p2587_p1 }
 0x114   : > { %2035 = vsyncadd (%p2588_p3), [#allocation13], 4294966256 }
 0x115   : > { %2037 = dma.done.wait (%p2589_p6), [#allocation16], 16   ;;  %p2590_p13 = pmov %p2587_p1 }
 0x116   : > { %v2082_v0 = vmov 0   ;;  %v1640_v1 = vld [vmem:[#allocation8 + $0x4] ss:$16 sps:$4 sm:$0xff]   ;;  %v1642_v2 = vld [vmem:[#allocation8] ss:$16 sps:$4 sm:$0xff]   ;;  %v485_v9 = vlaneseq  ;;  %v2083_v48 = vmov 0.0  }
 0x117   : > { %2039 = vsyncadd (%p2590_p13), [#allocation16], 4294967280  ;;  %760 = vmatprep.mubr.bf16.mxu0 %v2082_v0  ;;  %803 = vmatprep.mubr.bf16.mxu1 %v2082_v0  ;;  %v1643_v3 = vld [vmem:[#allocation8 + $0x24] ss:$16 sps:$4 sm:$0xff]   ;;  %v1645_v4 = vld [vmem:[#allocation8 + $0x20] ss:$16 sps:$4 sm:$0xff]  }
 0x118   : > { %728 = vmatprep.subr.bf16.mxu0 %v1640_v1  ;;  %v1646_v5 = vld [vmem:[#allocation8 + $0x44] ss:$16 sps:$4 sm:$0xff]   ;;  %v1648_v6 = vld [vmem:[#allocation8 + $0x40] ss:$16 sps:$4 sm:$0xff]   ;;  %v1664_v11 = vld [vmem:[#allocation8 + $0xc] ss:$16 sps:$4 sm:$0xff]  }
 0x119   : > { %729 = vmatpush1.bf16.msra.mxu0 %v1642_v2  ;;  %v1649_v7 = vld [vmem:[#allocation8 + $0x64] ss:$16 sps:$4 sm:$0xff]   ;;  %v1651_v8 = vld [vmem:[#allocation8 + $0x60] ss:$16 sps:$4 sm:$0xff]   ;;  %v1666_v14 = vld [vmem:[#allocation8 + $0x8] ss:$16 sps:$4 sm:$0xff]   ;;  %771 = vmatprep.subr.bf16.mxu1 %v1664_v11 }
 0x11a   : > { %730 = vmatprep.subr.bf16.mxu0 %v1643_v3  ;;  %v1652_v10 = vld [vmem:[#allocation8 + $0x84] ss:$16 sps:$4 sm:$0xff]   ;;  %v1667_v15 = vld [vmem:[#allocation8 + $0x2c] ss:$16 sps:$4 sm:$0xff]   ;;  %v2472_v16 = vshrl.u32 %v485_v9, 7  ;;  %772 = vmatpush1.bf16.msra.mxu1 %v1666_v14  ;;  %v492_v23 = vand.u32 127, %v485_v9 }
 0x11b   : > { %v481_v12 = vld [vmem:[%s2442_s13] sm:$0xff]  ;;  %v482_v13 = vld [vmem:[%s2442_s13 + $0x8] sm:$0xff]  ;;  %773 = vmatprep.subr.bf16.mxu1 %v1667_v15  ;;  %vm2084_vm3 = vmmov 0   ;;  %s474_s11 = scalar_lea.vmem [#allocation17], %s1370_s19  ;;  %s1449_s15 = sshll.u32 %s2058_s30, 8 }
 0x11c   : > { %v1669_v17 = vld [vmem:[#allocation8 + $0x28] ss:$16 sps:$4 sm:$0xff]   ;;  %v1654_v18 = vld [vmem:[#allocation8 + $0x80] ss:$16 sps:$4 sm:$0xff]   ;;  %v1670_v19 = vld [vmem:[#allocation8 + $0x4c] ss:$16 sps:$4 sm:$0xff]  }
 0x11d   : > { %731 = vmatpush1.bf16.msra.mxu0 %v1645_v4  ;;  %v1655_v20 = vld [vmem:[#allocation8 + $0xa4] ss:$16 sps:$4 sm:$0xff]   ;;  %v483_v21 = vrot.slane %v481_v12, 7  ;;  %v484_v22 = vrot.slane %v482_v13, 7  ;;  %vm487_vm0 = vcmp.lt.s32.totalorder %v2472_v16, 1  ;;  %vm500_vm1 = vcmp.eq.s32.totalorder %v2472_v16, 0 }
 0x11e   : > { %732 = vmatprep.subr.bf16.mxu0 %v1646_v5  ;;  %774 = vmatpush1.bf16.msra.mxu1 %v1669_v17  ;;  %v1672_v24 = vld [vmem:[#allocation8 + $0x48] ss:$16 sps:$4 sm:$0xff]   ;;  %v1657_v25 = vld [vmem:[#allocation8 + $0xa0] ss:$16 sps:$4 sm:$0xff]   ;;  %v1673_v26 = vld [vmem:[#allocation8 + $0x6c] ss:$16 sps:$4 sm:$0xff]  }
 0x11f   : > { %775 = vmatprep.subr.bf16.mxu1 %v1670_v19  ;;  %v1658_v27 = vld [vmem:[#allocation8 + $0xc4] ss:$16 sps:$4 sm:$0xff]   ;;  %v1660_v28 = vld [vmem:[#allocation8 + $0xc0] ss:$16 sps:$4 sm:$0xff]   ;;  %v489_v29 = vsel %vm487_vm0, %v484_v22, %v483_v21  ;;  %v1378_v30 = vld [vmem:[%s414_s12] ss:$0 sm:$0xff]  ;;  %v488_v34 = vsel %vm487_vm0, %v483_v21, %v484_v22 }
 0x120   : > { %vm504_vm2 = vcmp.lt.s32.totalorder %v492_v23, 16  ;;  %v1675_v31 = vld [vmem:[#allocation8 + $0x68] ss:$16 sps:$4 sm:$0xff]   ;;  %v1676_v32 = vld [vmem:[#allocation8 + $0x8c] ss:$16 sps:$4 sm:$0xff]   ;;  %v502_v35 = vsel %vm500_vm1, %v1378_v30, %v489_v29  ;;  %s1191_s22 = sshll.u32 %s474_s11, 4  ;;  %s2491_s22 = int_to_ptr.vmem [resolvable:$true] %s1191_s22 }
 0x121   : > { %733 = vmatpush1.bf16.msra.mxu0 %v1648_v6  ;;  %v1661_v33 = vld [vmem:[#allocation8 + $0xe4] ss:$16 sps:$4 sm:$0xff]   ;;  %v1663_v36 = vld [vmem:[#allocation8 + $0xe0] ss:$16 sps:$4 sm:$0xff]   ;;  %v1678_v37 = vld [vmem:[#allocation8 + $0x88] ss:$16 sps:$4 sm:$0xff]   ;;  %v505_v39 = vsel %vm504_vm2, %v502_v35, %v481_v12  ;;  %v506_v40 = vsel %vm504_vm2, %v488_v34, %v482_v13 }
 0x122   : > { %734 = vmatprep.subr.bf16.mxu0 %v1649_v7  ;;  %776 = vmatpush1.bf16.msra.mxu1 %v1672_v24  ;;  %v1679_v38 = vld [vmem:[#allocation8 + $0xac] ss:$16 sps:$4 sm:$0xff]   ;;  %v1681_v41 = vld [vmem:[#allocation8 + $0xa8] ss:$16 sps:$4 sm:$0xff]   ;;  %v507_v43 = vpack.c.bf16 %v506_v40, %v505_v39  ;;  %v546_v9 = vld [vmem:[#allocation9] sm:$0xf] }
 0x123   : > { %777 = vmatprep.subr.bf16.mxu1 %v1673_v26  ;;  %v1682_v42 = vld [vmem:[#allocation8 + $0xcc] ss:$16 sps:$4 sm:$0xff]   ;;  %v1684_v44 = vld [vmem:[#allocation8 + $0xc8] ss:$16 sps:$4 sm:$0xff]   ;;  %s2591_s26 = sld [smem:[#allocation31_spill]]  ;;  %s1178_s21 = scalar_lea.sflag [#allocation5], %s2436_s6 }
 0x124   : > { %v1685_v45 = vld [vmem:[#allocation8 + $0xec] ss:$16 sps:$4 sm:$0xff]   ;;  %v1687_v46 = vld [vmem:[#allocation8 + $0xe8] ss:$16 sps:$4 sm:$0xff]   ;;  %s1964_s0 = scalar_lea.vmem %s2491_s22, 256  ;;  %p2592_p9 = scmp.ne.s32.totalorder %s2577_s25, 0 }
 0x125   : > { %735 = vmatpush1.bf16.msra.mxu0 %v1651_v8  ;;  %v1688_v47 = vld [vmem:[#allocation12] sm:$0xff]   ;;  %v1689_v49 = vld [vmem:[#allocation12 + $0x8] sm:$0xff]   ;;  %v1690_v50 = vld [vmem:[#allocation12 + $0x10] sm:$0xff]   ;;  %v550_v8 = vsub.s32 0, %v2472_v16  ;;  %p1965_p4 = scmp.ne.s32.totalorder %s2491_s22, %s1964_s0  ;;  %s2085_s30 = smov [#allocation17]  }
 0x126   : > { %736 = vmatprep.subr.bf16.mxu0 %v1652_v10  ;;  %778 = vmatpush1.bf16.msra.mxu1 %v1675_v31  ;;  %v1691_v51 = vld [vmem:[#allocation12 + $0x18] sm:$0xff]   ;;  %v1692_v52 = vld [vmem:[#allocation12 + $0x20] sm:$0xff]   ;;  %v1693_v53 = vld [vmem:[#allocation12 + $0x28] sm:$0xff]   ;;  %v554_v10 = vsub.s32 1, %v2472_v16  ;;  %s1968_s8 = sshll.u32 %s2085_s30, 4  ;;  %s1969_s8 = int_to_ptr.vmem [resolvable:$false] %s1968_s8 }
 0x127   : > { %779 = vmatprep.subr.bf16.mxu1 %v1676_v32  ;;  %v1694_v54 = vld [vmem:[#allocation12 + $0x30] sm:$0xff]   ;;  %v1695_v55 = vld [vmem:[#allocation11 + $0x40] sm:$0xff]   ;;  %v1697_v57 = vld [vmem:[#allocation12 + $0x38] sm:$0xff]   ;;  %v551_v11 = vrot.slane %v546_v9, %v550_v8  ;;  %p1966_p0 = pnand %p1965_p4, %p2592_p9  ;;  %s1970_s20 = scalar_lea.vmem %s1969_s8, 512 }
 0x128   : > { %v1696_v56 = vld [vmem:[#allocation11] sm:$0xff]   ;;  %v1698_v58 = vld [vmem:[#allocation11 + $0x48] sm:$0xff]   ;;  %v1700_v60 = vld [vmem:[#allocation11 + $0x50] sm:$0xff]   ;;  %v555_v12 = vrot.slane %v546_v9, %v554_v10  ;;  %p1971_p12 = scmp.lt.s32.totalorder %s2491_s22, %s1969_s8  ;;  %p1972_p2 = scmp.lt.s32.totalorder %s1970_s20, %s1964_s0 }
 0x129   : > { %737 = vmatpush1.bf16.msra.mxu0 %v1654_v18  ;;  %v1699_v59 = vld [vmem:[#allocation11 + $0x8] sm:$0xff]   ;;  %v1701_v61 = vld [vmem:[#allocation11 + $0x10] sm:$0xff]   ;;  %v1702_v62 = vld [vmem:[#allocation11 + $0x58] sm:$0xff]   ;;  %s2496_s3 = scalar_lea.hbm %s2591_s26, %s1449_s15  ;;  %p1967_p7 = pneg %p1966_p0 }
 0x12a   : > { %738 = vmatprep.subr.bf16.mxu0 %v1655_v20  ;;  %780 = vmatpush1.bf16.msra.mxu1 %v1678_v37  ;;  %v1703_v63 = vld [vmem:[#allocation11 + $0x18] sm:$0xff]   ;;  %v1704_v0 = vld [vmem:[#allocation11 + $0x60] sm:$0xff]   ;;  %v1706_v2 = vld [vmem:[#allocation11 + $0x68] sm:$0xff]   ;;  %p1973_p10 = por %p1972_p2, %p1971_p12 }
 0x12b   : > { %781 = vmatprep.subr.bf16.mxu1 %v1679_v38  ;;  %v1705_v1 = vld [vmem:[#allocation11 + $0x20] sm:$0xff]   ;;  %v1707_v3 = vld [vmem:[#allocation11 + $0x28] sm:$0xff]   ;;  %v1708_v4 = vld [vmem:[#allocation11 + $0x70] sm:$0xff]  }
 0x12c   : > { %v1709_v5 = vld [vmem:[#allocation11 + $0x30] sm:$0xff]   ;;  %v1710_v6 = vld [vmem:[#allocation11 + $0x78] sm:$0xff]   ;;  %p1974_p11 = pnand %p1973_p10, %p1967_p7 }
 0x12d   : > { %739 = vmatpush1.bf16.msra.mxu0 %v1657_v25  ;;  %v1711_v7 = vld [vmem:[#allocation11 + $0x38] sm:$0xff]  }
 0x12e   : > { %740 = vmatprep.subr.bf16.mxu0 %v1658_v27  ;;  %782 = vmatpush1.bf16.msra.mxu1 %v1681_v41 }
 0x12f   : > { %783 = vmatprep.subr.bf16.mxu1 %v1682_v42 }
 0x131   : > { %741 = vmatpush1.bf16.msra.mxu0 %v1660_v28 }
 0x132   : > { %742 = vmatprep.subr.bf16.mxu0 %v1661_v33  ;;  %784 = vmatpush1.bf16.msra.mxu1 %v1684_v44 }
 0x133   : > { %785 = vmatprep.subr.bf16.mxu1 %v1685_v45 }
 0x135   : > { %743 = vmatpush1.bf16.msra.mxu0 %v1663_v36 }
 0x136   : > { %786 = vmatpush1.bf16.msra.mxu1 %v1687_v46  ;;  %1450 = vmatprep.subr.bf16.mxu0 %v1695_v55 }
 0x137   : > { %1481 = vmatprep.subr.bf16.mxu1 %v2083_v48 }
 0x138   : > { %761 = vmatmul.mubr.bf16.vlgmr.msra.gmra.mrb[0].mxu0 %v507_v43 }
 0x139   : > { %804 = vmatmul.mubr.bf16.vlgmr.msra.gmra.mrb[0].mxu1 %v507_v43  ;;  %1451 = vmatpush3.bf16.msra.mxu0 %v1696_v56 }
 0x13a   : > { %1482 = vmatpush3.bf16.msra.mxu1 %v1688_v47  ;;  %1452 = vmatprep.subr.bf16.mxu0 %v1698_v58 }
 0x13b   : > { %1483 = vmatprep.subr.bf16.mxu1 %v2083_v48  ;;  %1497 = vmatprep.mubr.msk.bf16.mxu1 %vm2084_vm3, %v2083_v48 }
 0x13d   : > { %1453 = vmatpush3.bf16.msra.mxu0 %v1699_v59 }
 0x13e   : > { %1484 = vmatpush3.bf16.msra.mxu1 %v1689_v49  ;;  %1454 = vmatprep.subr.bf16.mxu0 %v1700_v60 }
 0x13f   : > { %1485 = vmatprep.subr.bf16.mxu1 %v2083_v48 }
 0x141   : > { %1455 = vmatpush3.bf16.msra.mxu0 %v1701_v61 }
 0x142   : > { %1486 = vmatpush3.bf16.msra.mxu1 %v1690_v50  ;;  %1456 = vmatprep.subr.bf16.mxu0 %v1702_v62  ;;  %v558_v50 = vsub.s32 2, %v2472_v16 }
 0x143   : > { %1487 = vmatprep.subr.bf16.mxu1 %v2083_v48 }
 0x145   : > { %1457 = vmatpush3.bf16.msra.mxu0 %v1703_v63 }
 0x146   : > { %1488 = vmatpush3.bf16.msra.mxu1 %v1691_v51  ;;  %1458 = vmatprep.subr.bf16.mxu0 %v1704_v0  ;;  %v562_v51 = vsub.s32 3, %v2472_v16 }
 0x147   : > { %1489 = vmatprep.subr.bf16.mxu1 %v2083_v48 }
 0x148   : > { %v563_v55 = vrot.slane %v546_v9, %v562_v51 }
 0x149   : > { %1459 = vmatpush3.bf16.msra.mxu0 %v1705_v1 }
 0x14a   : > { %1490 = vmatpush3.bf16.msra.mxu1 %v1692_v52  ;;  %1460 = vmatprep.subr.bf16.mxu0 %v1706_v2 }
 0x14b   : > { %1491 = vmatprep.subr.bf16.mxu1 %v2083_v48 }
 0x14d   : > { %1461 = vmatpush3.bf16.msra.mxu0 %v1707_v3 }
 0x14e   : > { %1492 = vmatpush3.bf16.msra.mxu1 %v1693_v53  ;;  %1462 = vmatprep.subr.bf16.mxu0 %v1708_v4  ;;  %v559_v53 = vrot.slane %v546_v9, %v558_v50 }
 0x14f   : > { %1493 = vmatprep.subr.bf16.mxu1 %v2083_v48 }
 0x151   : > { %1463 = vmatpush3.bf16.msra.mxu0 %v1709_v5 }
 0x152   : > { %1494 = vmatpush3.bf16.msra.mxu1 %v1694_v54  ;;  %1464 = vmatprep.subr.bf16.mxu0 %v1710_v6 }
 0x153   : > { %1495 = vmatprep.subr.bf16.mxu1 %v2083_v48 }
 0x155   : > { %1465 = vmatpush3.bf16.msra.mxu0 %v1711_v7 }
 0x156   : > { %1496 = vmatpush3.bf16.msra.mxu1 %v1697_v57 }
 0x159   : > { %1498 = vmatmul.mubr.bf16.vlgmr.msra.gmra.mrb[4].mxu1 %v507_v43 }
 0x20b   : > { %v762_v13 = vpop.f32.mrb[0].mxu0 }
 0x20c   : > { %v763_v14 = vadd.f32 %v762_v13, %v551_v11  ;;  %v764_v15 = vpop.f32.mrb[1].mxu0  ;;  %v805_v30 = vpop.f32.mrb[0].mxu1 }
 0x20d   : > { %v765_v17 = vadd.f32 %v764_v15, %v555_v12  ;;  %v766_v18 = vpop.f32.mrb[2].mxu0  ;;  %v807_v31 = vpop.f32.mrb[1].mxu1  ;;  %v806_v59 = vadd.f32 %v805_v30, %v559_v53 }
 0x20e   : > { %v814_v19 = vmin.f32 %v763_v14, 30.0  ;;  %v767_v20 = vadd.f32 %v766_v18, %v551_v11  ;;  %v768_v21 = vpop.f32.mrb[3].mxu0  ;;  %v809_v32 = vpop.f32.mrb[2].mxu1  ;;  %v808_v62 = vadd.f32 %v807_v31, %v563_v55  ;;  %v1440_v31 = vld [vmem:[#allocation15] ss:$0 sm:$0xff] }
 0x20f   : > { %v815_v22 = vmin.f32 %v765_v17, 30.0  ;;  %v769_v23 = vadd.f32 %v768_v21, %v555_v12  ;;  %v811_v33 = vpop.f32.mrb[3].mxu1  ;;  %v810_v6 = vadd.f32 %v809_v32, %v559_v53 }
 0x210   : > { %v818_v24 = vmul.f32 1.442695, %v814_v19  ;;  %v816_v25 = vmin.f32 %v767_v20, 30.0  ;;  %v812_v10 = vadd.f32 %v811_v33, %v563_v55 }
 0x211   : > { %v820_v26 = vmul.f32 1.442695, %v815_v22  ;;  %v817_v27 = vmin.f32 %v769_v23, 30.0 }
 0x212   : > { %1712 = vpow2.f32 %v818_v24  ;;  %v822_v28 = vmul.f32 1.442695, %v816_v25 }
 0x213   : > { %1714 = vpow2.f32 %v820_v26  ;;  %v824_v29 = vmul.f32 1.442695, %v817_v27 }
 0x214   : > { %1716 = vpow2.f32 %v822_v28 }
 0x215   : > { %1718 = vpow2.f32 %v824_v29 }
 0x21c   : > { %v1713_v34 = vpop.eup %1712 }
 0x21d   : > { %v1715_v35 = vpop.eup %1714  ;;  %v826_v36 = vadd.f32 1.0, %v1713_v34 }
 0x21e   : > { %v1717_v37 = vpop.eup %1716  ;;  %v827_v38 = vadd.f32 1.0, %v1715_v35 }
 0x21f   : > { %v1719_v39 = vpop.eup %1718  ;;  %v830_v40 = vmul.f32 %v826_v36, %v826_v36  ;;  %v828_v41 = vadd.f32 1.0, %v1717_v37 }
 0x220   : > { %v831_v42 = vmul.f32 %v827_v38, %v827_v38  ;;  %v829_v43 = vadd.f32 1.0, %v1719_v39 }
 0x221   : > { %v842_v44 = vadd.f32 1.0, %v830_v40  ;;  %v832_v45 = vmul.f32 %v828_v41, %v828_v41  ;;  %v1411_v52 = vadd.f32 -1.0, %v830_v40 }
 0x222   : > { %v843_v46 = vadd.f32 1.0, %v831_v42  ;;  %v833_v47 = vmul.f32 %v829_v43, %v829_v43  ;;  %v1412_v54 = vadd.f32 -1.0, %v831_v42 }
 0x223   : > { %1720 = vrcp.f32 %v842_v44  ;;  %v844_v48 = vadd.f32 1.0, %v832_v45  ;;  %v1413_v56 = vadd.f32 -1.0, %v832_v45  ;;  %v838_v58 = vmul.f32 %v1411_v52, %v763_v14 }
 0x224   : > { %1722 = vrcp.f32 %v843_v46  ;;  %v845_v49 = vadd.f32 1.0, %v833_v47  ;;  %v1414_v57 = vadd.f32 -1.0, %v833_v47  ;;  %v839_v61 = vmul.f32 %v1412_v54, %v765_v17 }
 0x225   : > { %1724 = vrcp.f32 %v844_v48  ;;  %v840_v0 = vmul.f32 %v1413_v56, %v767_v20  ;;  %v1431_v20 = vld [vmem:[#allocation14] ss:$0 sm:$0xff] }
 0x226   : > { %1726 = vrcp.f32 %v845_v49  ;;  %v841_v3 = vmul.f32 %v1414_v57, %v769_v23 }
 0x22c   : > { %v1143_v15 = vpop.f32.mrb[4].mxu1 }
 0x22d   : > { %v1721_v60 = vpop.eup %1720  ;;  %v1499_v17 = vpop.f32.mrb[5].mxu1  ;;  %v1144_v21 = vadd.f32 %v1431_v20, %v1143_v15 }
 0x22e   : > { %v1723_v63 = vpop.eup %1722  ;;  %v847_v1 = vmul.f32 %v1721_v60, %v838_v58  ;;  %v1146_v18 = vpop.f32.mrb[6].mxu1 }
 0x22f   : > { %v1725_v2 = vpop.eup %1724  ;;  %v849_v4 = vmul.f32 %v1723_v63, %v839_v61  ;;  %v1500_v19 = vpop.f32.mrb[7].mxu1  ;;  %v1441_v22 = vmul.f32 -1.442695, %v1144_v21  ;;  %v1147_v23 = vadd.f32 %v1431_v20, %v1146_v18 }
 0x230   : > { %v1727_v5 = vpop.eup %1726  ;;  %v854_v16 = vmul.f32 %v847_v1, %v806_v59  ;;  %v851_v7 = vmul.f32 %v1725_v2, %v840_v0 }
 0x231   : > { %v855_v8 = vmul.f32 %v849_v4, %v808_v62  ;;  %v853_v9 = vmul.f32 %v1727_v5, %v841_v3  ;;  %1728 = vpow2.f32 %v1441_v22  ;;  %v1442_v24 = vmul.f32 -1.442695, %v1147_v23 }
 0x232   : > { %v856_v11 = vmul.f32 %v851_v7, %v810_v6 }
 0x233   : > { %v857_v12 = vmul.f32 %v853_v9, %v812_v10  ;;  %1730 = vpow2.f32 %v1442_v24 }
 0x234   : > { %v858_v13 = vpack.c.bf16 %v856_v11, %v854_v16 }
 0x235   : > { %v859_v14 = vpack.c.bf16 %v857_v12, %v855_v8 }
 0x237   : > { %1022 = vmatprep.mubr.bf16.mxu0 %v859_v14 }
 0x238   : > { %1023 = vmatmul.mubr.bf16.vlgmr.msra.gmra.mrb[4].mxu0 %v858_v13 }
 0x23b   : > { %v1729_v25 = vpop.eup %1728 }
 0x23c   : > { %v1167_v26 = vadd.f32 1.0, %v1729_v25 }
 0x23d   : > { %v1731_v27 = vpop.eup %1730 }
 0x23e   : > { %1732 = vrcp.f32 %v1167_v26  ;;  %v1168_v28 = vadd.f32 1.0, %v1731_v27 }
 0x240   : > { %1734 = vrcp.f32 %v1168_v28 }
 0x248   : > { %v1733_v34 = vpop.eup %1732 }
 0x24a   : > { %v1735_v40 = vpop.eup %1734 }
 0x30b   : > { %v1466_v29 = vpop.f32.mrb[4].mxu0 }
 0x30c   : > { %v1467_v30 = vpop.f32.mrb[5].mxu0 }
 0x30d   : > { %v1468_v32 = vadd.f32 %v1467_v30, %v1466_v29  ;;  %v1469_v33 = vpop.f32.mrb[6].mxu0 }
 0x30e   : > { %v1470_v35 = vpop.f32.mrb[7].mxu0 }
 0x30f   : > { %v1159_v36 = vadd.f32 %v1468_v32, %v1440_v31  ;;  %v1471_v37 = vadd.f32 %v1470_v35, %v1469_v33 }
 0x311   : > { %v1173_v38 = vmul.f32 %v1733_v34, %v1159_v36  ;;  %v1160_v39 = vadd.f32 %v1471_v37, %v1440_v31 }
 0x313   : > { %1175 = vst [vmem:[%s474_s11] sm:$0xff] %v1173_v38  ;;  %v1174_v41 = vmul.f32 %v1735_v40, %v1160_v39 }
 0x315   : > { %1176 = vst [vmem:[%s474_s11 + $0x8] sm:$0xff] %v1174_v41 }
 0x316   : > { %1977 = shalt.err (!%p1974_p11)
}
 0x317   : > { %s1978_s18 = scalar_lea.hbm %s2496_s3, 256  ;;  %s1982_s13 = scalar_lea.hbm %s2591_s26, 512 }
 0x318   : > { %p1979_p5 = scmp.ne.s32.totalorder %s2496_s3, %s1978_s18  ;;  %p1983_p3 = scmp.lt.u32.totalorder %s2496_s3, %s2591_s26 }
 0x319   : > { %p1984_p6 = scmp.lt.u32.totalorder %s1982_s13, %s1978_s18  ;;  %p1986_p4 = scmp.lt.u32.totalorder %s1978_s18, %s2496_s3 }
 0x31a   : > { %p1980_p8 = pnand %p1979_p5, %p2592_p9 }
 0x31b   : > { %p1985_p13 = por %p1984_p6, %p1983_p3 }
 0x31c   : > { %p1981_p1 = pneg %p1980_p8 }
 0x31d   : > { %p1987_p0 = por %p1986_p4, %p1985_p13 }
 0x31f   : > { %p1988_p7 = pnand %p1987_p0, %p1981_p1 }
 0x321   : > { %1991 = shalt.err (!%p1988_p7)
}
 0x322   : > { %s2086_s12 = smov 128   ;;  %s2087_s11 = smov 8  }
 0x323   : > { %1529 = dma.vmem_to_hbm [thread:$0]  (%p2592_p9), %s2491_s22, 256, %s2496_s3, %s1178_s21, %s2086_s12, %s2086_s12, %s2087_s11  }
 0x324 PF: > { %s1206_s15 = sand.u32 1, %s2046_s27   ;;  %p2593_p12 = scmp.ne.s32.totalorder %s2578_s17, 0 }
 0x325   : > { %p2594_p2 = scmp.ge.s32.totalorder %s2066_s10, 2  ;;  %s1207_s24 = scalar_lea.sflag [#allocation5], %s1206_s15 }
 0x327   : > { %p1558_p10 = pnand %p2594_p2, %p2593_p12 }
 0x329   : > { %2041 = dma.done.wait (!%p1558_p10), %s1207_s24, 256  }
 0x32a   : > { %2043 = vsyncadd (!%p1558_p10), %s1207_s24, 4294967040  ;;  %s30_s10 = sadd.s32 1, %s2066_s10   ;;  %s2595_s27 = smov %s2050_s28 }
 0x32b   : > { %p27_p11 = scmp.ge.s32.totalorder %s30_s10, 4   ;;  %s2596_s28 = smov %s2054_s29 }
 0x32c   : > { %s2597_s29 = smov %s2353_s14  ;;  %s2598_s30 = smov %s2062_s9 }
 0x32d   : > { %s2599_s9 = smov %s2601_s2  ;;  %29 = sbr.rel (!%p27_p11) target bundleno = 19 (0x13), region = 145 }
 0x334   :  { %1212 = vsyncpa [#allocation4], 1 }
 0x335   :  { %1214 = vsyncpa [#allocation4 + $0x1], 1 }
 0x336   :  { %1215 = vsyncpa [#allocation7], 1 }
 0x337   :  { %1217 = vsyncpa [#allocation7 + $0x1], 1 }
 0x338   :  { %1218 = vsyncpa [#allocation10], 1 }
 0x339   :  { %1219 = vsyncpa [#allocation13], 1 }
 0x33a   :  { %1220 = vsyncpa [#allocation16], 1 }
 0x33b   :  { %1221 = vsyncpa [#allocation5], 1 }
 0x33c   :  { %1223 = vsyncpa [#allocation5 + $0x1], 1 }

</bundles_post_ra>
